<compile_context>
chip_gen: v6e
topology: v6e:2x2x1
jax: 0.10.0
libtpu: 0.0.40
codegen_flags: <defaults>
</compile_context>

<pallas_src>
import functools

import jax
import jax.numpy as jnp
from jax import lax
from jax.experimental import pallas as pl
from jax.experimental.pallas import tpu as pltpu


def _matmul_xyt_kernel(x_ref, y_ref, o_ref, acc_ref):
    """One (tm, tn) output tile; accumulates over the K grid axis."""
    @pl.when(pl.program_id(2) == 0)
    def _():
        acc_ref[...] = jnp.zeros_like(acc_ref)

    # x_ref: (tm, tk), y_ref: (tn, tk)  ->  (tm, tn), contracting on K (dim 1
    # of both operands) so Y feeds the MXU in its native [N, K] layout.
    acc_ref[...] += lax.dot_general(
        x_ref[...],
        y_ref[...],
        dimension_numbers=(((1,), (1,)), ((), ())),
        preferred_element_type=jnp.float32,
    )

    @pl.when(pl.program_id(2) == pl.num_programs(2) - 1)
    def _():
        o_ref[...] = acc_ref[...].astype(o_ref.dtype)


def _round_up(a: int, b: int) -> int:
    return (a + b - 1) // b * b


@functools.partial(jax.jit, static_argnames=("tm", "tn", "tk", "cast_to_bf16"))
def linear_forward(X, Y, *, tm: int = 256, tn: int = 256, tk: int = 512,
                   cast_to_bf16: bool = False):
    """Computes X @ Y.T via a tiled Pallas TPU kernel.

    X: (M, K), Y: (N, K)  ->  (M, N)
    """
    M, K = X.shape
    N, K2 = Y.shape
    assert K == K2, "inner dimensions must match"

    out_dtype = jnp.promote_types(X.dtype, Y.dtype)

    if cast_to_bf16:
        # Optional: bf16 operands + f32 accumulation for v6e/v7x MXU peak.
        # Off by default to keep exact f32 matmul semantics.
        X = X.astype(jnp.bfloat16)
        Y = Y.astype(jnp.bfloat16)

    # --- tile sizes ---------------------------------------------------------
    # Constraints: tm % 8 == 0 (sublane), tn % 128 == 0 (output lane dim),
    # tk % 128 == 0 (input lane dim). Clamp to the padded problem dims so tiny
    # problems don't over-allocate.
    tm_ = min(tm, _round_up(M, 8))
    tn_ = min(tn, _round_up(N, 128))
    tk_ = min(tk, _round_up(K, 128))

    # --- pad operands to tile multiples (zeros are matmul-neutral) ----------
    Mp = _round_up(M, tm_)
    Np = _round_up(N, tn_)
    Kp = _round_up(K, tk_)

    Xp = X if (Mp == M and Kp == K) else jnp.pad(X, ((0, Mp - M), (0, Kp - K)))
    Yp = Y if (Np == N and Kp == K) else jnp.pad(Y, ((0, Np - N), (0, Kp - K)))

    grid = (Mp // tm_, Np // tn_, Kp // tk_)

    in_bytes = Xp.dtype.itemsize
    out_bytes = jnp.dtype(out_dtype).itemsize
    cost = pl.CostEstimate(
        flops=2 * Mp * Np * Kp,
        transcendentals=0,
        bytes_accessed=(Mp * Kp + Np * Kp) * in_bytes + Mp * Np * out_bytes,
    )

    out_padded = pl.pallas_call(
        _matmul_xyt_kernel,
        out_shape=jax.ShapeDtypeStruct((Mp, Np), out_dtype),
        grid=grid,
        in_specs=[
            pl.BlockSpec((tm_, tk_), lambda i, j, k: (i, k)),
            pl.BlockSpec((tn_, tk_), lambda i, j, k: (j, k)),
        ],
        out_specs=pl.BlockSpec((tm_, tn_), lambda i, j, k: (i, j)),
        scratch_shapes=[pltpu.VMEM((tm_, tn_), jnp.float32)],
        compiler_params=pltpu.CompilerParams(
            dimension_semantics=("parallel", "parallel", "arbitrary"),
        ),
        cost_estimate=cost,
    )(Xp, Yp)

    # Slice away the padding.
    if Mp != M or Np != N:
        out_padded = out_padded[:M, :N]
    return out_padded


if __name__ == "__main__":
    key = jax.random.PRNGKey(0)
    kx, ky = jax.random.split(key)

    M, K, N = 8, 32, 16
    X = jax.random.normal(kx, (M, K), dtype=jnp.float32)
    Y = jax.random.normal(ky, (N, K), dtype=jnp.float32)

    out = linear_forward(X, Y)
    out = jax.block_until_ready(out)

    ref = X @ Y.T
    assert out.shape == (M, N)
    assert jnp.allclose(out, ref, atol=1e-5, rtol=1e-5)

    print("KERNEL_OK")
</pallas_src>

<mosaic_0001>
module attributes {stable_mosaic.version = 11 : i64} {
  func.func @_matmul_xyt_kernel(%arg0: i32, %arg1: i32, %arg2: i32, %arg3: memref<8x128xf32, #tpu.memory_space<vmem>>, %arg4: memref<128x128xf32, #tpu.memory_space<vmem>>, %arg5: memref<8x128xf32, #tpu.memory_space<vmem>>, %arg6: memref<8x128xf32, #tpu.memory_space<vmem>>) attributes {dimension_semantics = [#tpu.dimension_semantics<parallel>, #tpu.dimension_semantics<parallel>, #tpu.dimension_semantics<arbitrary>], iteration_bounds = array<i64: 1, 1, 1>, scalar_prefetch = 0 : i64, scratch_operands = 1 : i64, tpu.core_type = #tpu.core_type<tc>, window_params = [{transform_indices = @transform_0, window_bounds = array<i64: 8, 128>}, {transform_indices = @transform_1, window_bounds = array<i64: 128, 128>}, {transform_indices = @transform_2, window_bounds = array<i64: 8, 128>}]} {
    %c0_i32 = arith.constant 0 : i32
    %0 = arith.cmpi eq, %arg2, %c0_i32 : i32
    %1 = arith.extui %0 : i1 to i32
    %c0_i32_0 = arith.constant 0 : i32
    %2 = arith.cmpi ne, %1, %c0_i32_0 : i32
    scf.if %2 {
      %cst_10 = arith.constant 0.000000e+00 : f32
      %12 = vector.broadcast %cst_10 : f32 to vector<8x128xf32>
      %c0_11 = arith.constant 0 : index
      %c0_12 = arith.constant 0 : index
      %13 = vector.load %arg6[%c0_11, %c0_12] : memref<8x128xf32, #tpu.memory_space<vmem>>, vector<8x128xf32>
      tpu.vector_store %arg6[%c0_11, %c0_12], %12 {strides = array<i32>} : memref<8x128xf32, #tpu.memory_space<vmem>>, vector<8x128xf32>,
    } else {
    }
    %c0 = arith.constant 0 : index
    %c0_1 = arith.constant 0 : index
    %3 = vector.load %arg6[%c0, %c0_1] : memref<8x128xf32, #tpu.memory_space<vmem>>, vector<8x128xf32>
    %c0_2 = arith.constant 0 : index
    %c0_3 = arith.constant 0 : index
    %4 = vector.load %arg3[%c0_2, %c0_3] : memref<8x128xf32, #tpu.memory_space<vmem>>, vector<8x128xf32>
    %c0_4 = arith.constant 0 : index
    %c0_5 = arith.constant 0 : index
    %5 = vector.load %arg4[%c0_4, %c0_5] : memref<128x128xf32, #tpu.memory_space<vmem>>, vector<128x128xf32>
    %cst = arith.constant dense<0.000000e+00> : vector<8x128xf32>
    %6 = tpu.matmul %4, %5, %cst {dimension_numbers = #tpu.dot_dimension_numbers<[1], [1], [0], [0], [0, 0, 1, 0], [], []>} : vector<8x128xf32>, vector<128x128xf32>, vector<8x128xf32> -> vector<8x128xf32>
    %7 = arith.addf %3, %6 : vector<8x128xf32>
    %c0_6 = arith.constant 0 : index
    %c0_7 = arith.constant 0 : index
    %8 = vector.load %arg6[%c0_6, %c0_7] : memref<8x128xf32, #tpu.memory_space<vmem>>, vector<8x128xf32>
    tpu.vector_store %arg6[%c0_6, %c0_7], %7 {strides = array<i32>} : memref<8x128xf32, #tpu.memory_space<vmem>>, vector<8x128xf32>,
    %c0_i32_8 = arith.constant 0 : i32
    %9 = arith.cmpi eq, %arg2, %c0_i32_8 : i32
    %10 = arith.extui %9 : i1 to i32
    %c0_i32_9 = arith.constant 0 : i32
    %11 = arith.cmpi ne, %10, %c0_i32_9 : i32
    scf.if %11 {
      %c0_10 = arith.constant 0 : index
      %c0_11 = arith.constant 0 : index
      %12 = vector.load %arg6[%c0_10, %c0_11] : memref<8x128xf32, #tpu.memory_space<vmem>>, vector<8x128xf32>
      %c0_12 = arith.constant 0 : index
      %c0_13 = arith.constant 0 : index
      %13 = vector.load %arg5[%c0_12, %c0_13] : memref<8x128xf32, #tpu.memory_space<vmem>>, vector<8x128xf32>
      tpu.vector_store %arg5[%c0_12, %c0_13], %12 {strides = array<i32>} : memref<8x128xf32, #tpu.memory_space<vmem>>, vector<8x128xf32>,
    } else {
    }
    return
  }
  func.func @transform_0(%arg0: i32, %arg1: i32, %arg2: i32) -> (i32, i32) {
    %c0_i32 = arith.constant 0 : i32
    return %arg0, %arg2 : i32, i32
  }
  func.func @transform_1(%arg0: i32, %arg1: i32, %arg2: i32) -> (i32, i32) {
    %c0_i32 = arith.constant 0 : i32
    return %arg1, %arg2 : i32, i32
  }
  func.func @transform_2(%arg0: i32, %arg1: i32, %arg2: i32) -> (i32, i32) {
    %c0_i32 = arith.constant 0 : i32
    return %arg0, %arg1 : i32, i32
  }
}

</mosaic_0001>

<bundles_post_ra>
// kernel: linear_forward.1
= control target key start
LH: loop header
LB: loop body
LE: loop exit
PB: predicated region body
PF: predicated region fallthrough
CT: control target
= control target key end

     0   :  { %v203_v1 = vmov 0.0   ;;  %vm204_vm0 = vmmov 0   ;;  %s275_s0 = inlined_call_operand.vmem [shape: f32[8,128], index: 0, kind: input, shape index: {}]   ;;  %s276_s1 = inlined_call_operand.vmem [shape: f32[128,128], index: 1, kind: input, shape index: {}]   ;;  %s277_s2 = inlined_call_operand.hbm [shape: f32[8,128], index: 2, kind: output, shape index: {}]  }
   0x1   :  { %v34_v0 = vld [vmem:[%s276_s1 + $0x78] sm:$0xff]  ;;  %143 = vmatprep.subr.mxu0 %v203_v1  ;;  %175 = vmatprep.mubr.msk.f32.mxu0 %vm204_vm0, %v203_v1  ;;  %v33_v2 = vld [vmem:[%s276_s1 + $0x70] sm:$0xff] }
   0x2   :  { %144 = vmatpush3.xpose.msra.mxu0 %v34_v0 }
   0x3   :  { %145 = vmatprep.subr.mxu0 %v203_v1 }
   0x4   :  { %7 = vsyncpa [#allocation4], 0  ;;  %v32_v3 = vld [vmem:[%s276_s1 + $0x68] sm:$0xff]  ;;  %v31_v4 = vld [vmem:[%s276_s1 + $0x60] sm:$0xff]  ;;  %s205_s15 = smov [#allocation3]  }
   0x5   :  { %v30_v5 = vld [vmem:[%s276_s1 + $0x58] sm:$0xff]  ;;  %v29_v6 = vld [vmem:[%s276_s1 + $0x50] sm:$0xff]  ;;  %v28_v7 = vld [vmem:[%s276_s1 + $0x48] sm:$0xff]  ;;  %s118_s16 = sshll.u32 %s205_s15, 4  ;;  %s119_s16 = int_to_ptr.vmem [resolvable:$true] %s118_s16 }
   0x6   :  { %146 = vmatpush3.xpose.msra.mxu0 %v33_v2  ;;  %v27_v8 = vld [vmem:[%s276_s1 + $0x40] sm:$0xff]  ;;  %v26_v9 = vld [vmem:[%s276_s1 + $0x38] sm:$0xff]  ;;  %v25_v10 = vld [vmem:[%s276_s1 + $0x30] sm:$0xff]  ;;  %s181_s17 = scalar_lea.vmem %s119_s16, 128  ;;  %p186_p1 = scmp.lt.s32.totalorder %s119_s16, %s119_s16 }
   0x7   :  { %147 = vmatprep.subr.mxu0 %v203_v1  ;;  %v24_v11 = vld [vmem:[%s276_s1 + $0x28] sm:$0xff]  ;;  %v23_v12 = vld [vmem:[%s276_s1 + $0x20] sm:$0xff]  ;;  %v22_v13 = vld [vmem:[%s276_s1 + $0x18] sm:$0xff]  ;;  %p182_p0 = scmp.ne.s32.totalorder %s119_s16, %s181_s17  ;;  %p187_p2 = scmp.lt.s32.totalorder %s181_s17, %s181_s17 }
   0x8   :  { %v21_v14 = vld [vmem:[%s276_s1 + $0x10] sm:$0xff]  ;;  %v20_v15 = vld [vmem:[%s276_s1 + $0x8] sm:$0xff]  ;;  %v19_v16 = vld [vmem:[%s276_s1] sm:$0xff] }
   0x9   :  { %v18_v17 = vld [vmem:[%s275_s0] sm:$0xff]  ;;  %p188_p3 = por %p187_p2, %p186_p1 }
   0xa   :  { %148 = vmatpush3.xpose.msra.mxu0 %v32_v3 }
   0xb   :  { %149 = vmatprep.subr.mxu0 %v203_v1  ;;  %p189_p4 = pnand %p188_p3, %p182_p0 }
   0xe   :  { %150 = vmatpush3.xpose.msra.mxu0 %v31_v4 }
   0xf   :  { %151 = vmatprep.subr.mxu0 %v203_v1 }
  0x12   :  { %152 = vmatpush3.xpose.msra.mxu0 %v30_v5 }
  0x13   :  { %153 = vmatprep.subr.mxu0 %v203_v1 }
  0x16   :  { %154 = vmatpush3.xpose.msra.mxu0 %v29_v6 }
  0x17   :  { %155 = vmatprep.subr.mxu0 %v203_v1 }
  0x1a   :  { %156 = vmatpush3.xpose.msra.mxu0 %v28_v7 }
  0x1b   :  { %157 = vmatprep.subr.mxu0 %v203_v1 }
  0x1e   :  { %158 = vmatpush3.xpose.msra.mxu0 %v27_v8 }
  0x1f   :  { %159 = vmatprep.subr.mxu0 %v203_v1 }
  0x22   :  { %160 = vmatpush3.xpose.msra.mxu0 %v26_v9 }
  0x23   :  { %161 = vmatprep.subr.mxu0 %v203_v1 }
  0x26   :  { %162 = vmatpush3.xpose.msra.mxu0 %v25_v10 }
  0x27   :  { %163 = vmatprep.subr.mxu0 %v203_v1 }
  0x2a   :  { %164 = vmatpush3.xpose.msra.mxu0 %v24_v11 }
  0x2b   :  { %165 = vmatprep.subr.mxu0 %v203_v1 }
  0x2e   :  { %166 = vmatpush3.xpose.msra.mxu0 %v23_v12 }
  0x2f   :  { %167 = vmatprep.subr.mxu0 %v203_v1 }
  0x32   :  { %168 = vmatpush3.xpose.msra.mxu0 %v22_v13 }
  0x33   :  { %169 = vmatprep.subr.mxu0 %v203_v1 }
  0x36   :  { %170 = vmatpush3.xpose.msra.mxu0 %v21_v14 }
  0x37   :  { %171 = vmatprep.subr.mxu0 %v203_v1 }
  0x3a   :  { %172 = vmatpush3.xpose.msra.mxu0 %v20_v15 }
  0x3b   :  { %173 = vmatprep.subr.mxu0 %v203_v1 }
  0x3e   :  { %174 = vmatpush3.xpose.msra.mxu0 %v19_v16 }
  0x41   :  { %176 = vmatmul.mubr.f32.vlgmr.msra.gmra.mxu0 %v18_v17 }
 0x101   :  { %v101_v18 = vpop.f32.mrf.mxu0 }
 0x102   :  { %111 = vst [vmem:[#allocation3] sm:$0xff] %v101_v18 }
 0x103   :  { %v177_v19 = vpop.f32.mrf.mxu0 }
 0x104   :  { %192 = shalt.err (!%p189_p4)
}
 0x105   :  { %121 = dma.vmem_to_hbm [thread:$0]  %s119_s16, 128, %s277_s2, [#allocation4]  }
 0x106   :  { %201 = dma.done.wait [#allocation4], 128  }
 0x107   :  { %202 = vsyncadd [#allocation4], 4294967168 }
 0x108   :  { %125 = vsyncpa [#allocation4], 1 }

</bundles_post_ra>
